<compile_context>
chip_gen: v7x
topology: tpu7x:2x2x1
jax: 0.10.0
libtpu: 0.0.40
codegen_flags: <defaults>
</compile_context>

<pallas_src>
import jax
import jax.numpy as jnp
from jax import lax
from jax.experimental import pallas as pl
from jax.experimental.pallas import tpu as pltpu

ALPHA = 0.5
TEMPERATURE = 1.0


def _softplus(x):
    # Numerically stable log(1 + exp(x)); softplus(-inf) == 0.
    return jnp.maximum(x, 0.0) + jnp.log(1.0 + jnp.exp(-jnp.abs(x)))


def _log_softmax_over_docs(x):
    # log-softmax over axis 0 (the document axis of the (B, QB) score tile).
    m = jnp.max(x, axis=0, keepdims=True)
    z = x - m
    return z - jnp.log(jnp.sum(jnp.exp(z), axis=0, keepdims=True))


def _make_kernel(B, QB, DB, Nq, Nd, alpha, temperature, distill):
    inv_t = 1.0 / float(temperature)
    kl_scale = float(alpha) * float(temperature) ** 2

    def block_maxsim(q, d):
        """MaxSim of QB query batches vs DB document batches -> (DB, QB).

        q: (QB*Nq, E), d: (DB*Nd, E) in their native (bf16/f32) dtype.  The
        similarity is computed transposed (doc tokens along sublanes) so the
        max over doc tokens is mostly vreg-wise VPU work; f32 MXU accumulation.
        """
        sim = lax.dot_general(
            d, q,
            dimension_numbers=(((1,), (1,)), ((), ())),
            preferred_element_type=jnp.float32,
        )                                                     # (DB*Nd, QB*Nq)
        m = jnp.max(sim.reshape(DB, Nd, QB * Nq), axis=1)     # (DB, QB*Nq)
        return jnp.sum(m.reshape(DB, QB, Nq), axis=-1)        # (DB, QB)

    def epilogue(qb, scores, t_scores):
        """Per-query loss from the (B, QB) score tiles (docs on rows)."""
        doc_ids = lax.broadcasted_iota(jnp.int32, (B, QB), 0)
        qry_ids = lax.broadcasted_iota(jnp.int32, (B, QB), 1) + qb * QB
        diag = doc_ids == qry_ids

        # Contrastive (pairwise softplus) term, per query column.
        pos = jnp.sum(jnp.where(diag, scores, 0.0), axis=0, keepdims=True)
        neg = jnp.max(jnp.where(diag, -jnp.inf, scores), axis=0, keepdims=True)
        per_query = _softplus(neg - pos)                      # (1, QB)

        if t_scores is not None:
            # KL(teacher || student) distillation term, per query column.
            s_logp = _log_softmax_over_docs(scores * inv_t)
            t_logp = _log_softmax_over_docs(t_scores * inv_t)
            t_prob = jnp.exp(t_logp)
            kl_elem = jnp.where(t_prob > 0.0, t_prob * (t_logp - s_logp), 0.0)
            per_query = per_query + kl_scale * jnp.sum(
                kl_elem, axis=0, keepdims=True)
        return per_query.reshape(1, 1, QB)                    # lane-dense row

    if distill:
        def kernel(q_ref, d_ref, tq_ref, td_ref, o_ref, s_scr, t_scr):
            qb = pl.program_id(0)            # query block        (parallel)
            c = pl.program_id(1)             # document group     (reduction)
            # Direct slab store of DB score rows (no masked RMW of the tile).
            row0 = pl.multiple_of(c * DB, DB)
            s_scr[pl.ds(row0, DB), :] = block_maxsim(q_ref[...], d_ref[...])
            t_scr[pl.ds(row0, DB), :] = block_maxsim(tq_ref[...], td_ref[...])

            @pl.when(c == pl.num_programs(1) - 1)
            def _():
                o_ref[...] = epilogue(qb, s_scr[...], t_scr[...])
        return kernel

    def kernel(q_ref, d_ref, o_ref, s_scr):
        qb = pl.program_id(0)
        c = pl.program_id(1)
        row0 = pl.multiple_of(c * DB, DB)
        s_scr[pl.ds(row0, DB), :] = block_maxsim(q_ref[...], d_ref[...])

        @pl.when(c == pl.num_programs(1) - 1)
        def _():
            o_ref[...] = epilogue(qb, s_scr[...], None)
    return kernel


def _tpu_generation_info():
    """Best-effort (physical VMEM bytes, TensorCores per chip) with fallbacks."""
    vmem_bytes, num_cores = 128 * 1024 * 1024, 1

    def _pos_int(v):
        try:
            v = int(v)
        except Exception:
            return None
        return v if v > 0 else None

    try:
        info = pltpu.get_tpu_info()
        for name in ("vmem_capacity_bytes", "vmem_bytes", "vmem_size_bytes"):
            v = _pos_int(getattr(info, name, None))
            if v:
                vmem_bytes = v
                break
        for name in ("num_tensorcores", "tensorcore_count", "num_cores",
                     "num_cores_per_chip", "cores_per_chip", "core_count"):
            v = _pos_int(getattr(info, name, None))
            if v:
                num_cores = v
                break
    except Exception:
        pass
    try:
        kind = jax.devices()[0].device_kind.lower()
        if "v7" in kind:                 # v7x: 2 TCs / chip, 64 MiB VMEM / TC
            num_cores = max(num_cores, 2)
            vmem_bytes = min(vmem_bytes, 64 * 1024 * 1024)
    except Exception:
        pass
    return vmem_bytes, num_cores


def _pick_doc_block(B, QB, Nq, Nd, E, itemsize, vmem_bytes, n_models):
    """Largest DB dividing B whose f32 sim tiles + buffers fit the VMEM budget."""
    sim_budget = int(0.35 * vmem_bytes)       # student(+teacher) f32 sim tiles
    total_budget = int(0.55 * vmem_bytes)     # headroom for Mosaic scratch
    resident = (n_models * 2 * QB * Nq * E * itemsize   # q/tq (double-buffered)
                + n_models * B * QB * 4)                # score scratch
    best = None
    for db in range(1, B + 1):
        if B % db:
            continue
        if (db * Nd) % 8 != 0 and db != B:    # BlockSpec (8,128) rule
            continue
        sim = n_models * (QB * Nq) * (db * Nd) * 4
        docs = n_models * 2 * (db * Nd) * E * itemsize
        if sim <= sim_budget and resident + sim + docs <= total_budget:
            best = db
    if best is None:                          # huge-shape fallback: smallest legal
        for db in range(1, B + 1):
            if B % db == 0 and ((db * Nd) % 8 == 0 or db == B):
                best = db
                break
    return best if best is not None else B


def colbert_pairwise_distill_kl_loss(
        query_embeddings, doc_embeddings,
        teacher_query_outputs=None, teacher_doc_outputs=None, *,
        alpha=ALPHA, temperature=TEMPERATURE, eval=False,
        mxu_dtype=jnp.bfloat16,
        query_block_batches=None, doc_block_batches=None):
    """Combined ColBERT contrastive + KL-distillation loss (forward pass).

    query_embeddings / teacher_query_outputs: (B, Nq, E)
    doc_embeddings   / teacher_doc_outputs:   (B, Nd, E)
    eval=True computes the contrastive term only (teacher not required).
    mxu_dtype: dtype fed to the MXU (bf16 default; accumulation is always f32).
    """
    q, d = query_embeddings, doc_embeddings
    B, Nq, E = q.shape
    Bc, Nd, Ec = d.shape
    assert B == Bc, f"Batch size mismatch: {B} vs {Bc}"
    assert E == Ec, f"Embedding dimension mismatch: {E} vs {Ec}"

    distill = not eval
    if distill:
        tq, td = teacher_query_outputs, teacher_doc_outputs
        assert tq is not None and td is not None, \
            "Teacher outputs must be provided when eval=False"
        assert tq.shape == (B, Nq, E) and td.shape == (B, Nd, E), \
            "Shape mismatch between student and teacher outputs"
        tq = lax.stop_gradient(tq)     # mirrors torch.no_grad() on the teacher
        td = lax.stop_gradient(td)
    n_models = 2 if distill else 1

    vmem_bytes, num_cores = _tpu_generation_info()

    # Query-block size: split 2-way only on >=2-TensorCore chips (v7x), where
    # the "parallel" grid axis shards the score matrix across cores.  On 1-TC
    # v5e/v6e keep QB=B so d/td stream from HBM exactly once.
    if query_block_batches is None:
        QB = B
        if num_cores >= 2 and B % 2 == 0 and ((B // 2) * Nq) % 8 == 0:
            QB = B // 2
    else:
        QB = int(query_block_batches)
    assert B % QB == 0, "query_block_batches must divide batch size"
    assert (QB * Nq) % 8 == 0 or QB == B, \
        "query block (QB * num_query_tokens) must be a multiple of 8"
    n_qb = B // QB

    mxu_dt = jnp.dtype(mxu_dtype) if mxu_dtype is not None else jnp.dtype(q.dtype)
    itemsize = mxu_dt.itemsize

    # Document-group size: largest divisor of B whose f32 sim intermediates
    # (the dominant VMEM consumer) + double-buffered inputs fit the budget.
    if doc_block_batches is None:
        DB = _pick_doc_block(B, QB, Nq, Nd, E, itemsize, vmem_bytes, n_models)
    else:
        DB = int(doc_block_batches)
    assert B % DB == 0, "doc_block_batches must divide batch size"
    assert (DB * Nd) % 8 == 0 or DB == B, \
        "doc block (DB * num_doc_tokens) must be a multiple of 8"
    n_steps = B // DB

    # Flatten (batch, tokens) so each MaxSim block is one MXU matmul; cast to
    # the MXU input dtype (bf16 default -> native full-rate path, half the HBM
    # traffic; accumulation stays f32 inside the kernel).
    def prep(x, n_tok):
        x = x.reshape(B * n_tok, E)
        return x if x.dtype == mxu_dt else x.astype(mxu_dt)

    inputs = [prep(q, Nq), prep(d, Nd)]
    if distill:
        inputs += [prep(tq, Nq), prep(td, Nd)]

    q_spec = pl.BlockSpec((QB * Nq, E), lambda i, c: (i, 0))   # resident over c
    d_spec = pl.BlockSpec((DB * Nd, E), lambda i, c: (c, 0))   # streamed over c
    in_specs = [q_spec, d_spec] * n_models
    out_spec = pl.BlockSpec((1, 1, QB), lambda i, c: (i, 0, 0))
    scratch_shapes = [pltpu.VMEM((B, QB), jnp.float32) for _ in range(n_models)]

    # VMEM bookkeeping + cost hint for the XLA scheduler.
    est = (n_models * (QB * Nq) * (DB * Nd) * 4          # f32 sim tiles
           + n_models * 2 * (DB * Nd) * E * itemsize     # d/td double buffers
           + n_models * 2 * (QB * Nq) * E * itemsize     # q/tq buffers
           + n_models * B * QB * 4)                      # score scratch
    vmem_limit = int(min(int(0.85 * vmem_bytes),
                         max(32 * 1024 * 1024, 2 * est)))
    cost = pl.CostEstimate(
        flops=int(2 * n_models * (B * Nq) * (B * Nd) * E),
        transcendentals=int(4 * n_models * B * B),
        bytes_accessed=int(n_models * (B * Nq * E + n_qb * B * Nd * E) * itemsize
                           + n_qb * QB * 4))

    per_query = pl.pallas_call(
        _make_kernel(B, QB, DB, Nq, Nd, alpha, temperature, distill),
        out_shape=jax.ShapeDtypeStruct((n_qb, 1, QB), jnp.float32),
        grid_spec=pltpu.PrefetchScalarGridSpec(
            num_scalar_prefetch=0,
            grid=(n_qb, n_steps),
            in_specs=in_specs,
            out_specs=out_spec,
            scratch_shapes=scratch_shapes),
        compiler_params=pltpu.CompilerParams(
            dimension_semantics=("parallel", "arbitrary"),
            vmem_limit_bytes=vmem_limit),
        cost_estimate=cost,
    )(*inputs)

    # Batch mean: contrastive .mean() and KLDiv 'batchmean' both divide by B.
    return jnp.sum(per_query) / B


def _reference_loss(q, d, tq=None, td=None, alpha=ALPHA, temperature=TEMPERATURE,
                    eval=False):
    """Pure-JAX f32 reference mirroring the PyTorch forward."""
    def maxsim(a, b):
        sim = jnp.einsum('bnd,csd->bcns', a.astype(jnp.float32),
                         b.astype(jnp.float32))
        return sim.max(axis=3).sum(axis=2)

    scores = maxsim(q, d)
    B = scores.shape[0]
    pos = jnp.diag(scores)
    mask = jnp.eye(B, dtype=bool)
    neg = jnp.where(mask, -jnp.inf, scores).max(axis=1)
    contrastive = jax.nn.softplus(neg - pos).mean()
    if eval:
        return contrastive

    t_scores = maxsim(tq, td)
    s_logp = jax.nn.log_softmax(scores / temperature, axis=1)
    t_prob = jax.nn.softmax(t_scores / temperature, axis=1)
    kl = jnp.sum(t_prob * (jnp.log(t_prob) - s_logp)) / B
    return contrastive + alpha * kl * temperature ** 2


if __name__ == "__main__":
    key = jax.random.PRNGKey(0)
    k1, k2, k3, k4 = jax.random.split(key, 4)

    B, Nq, Nd, E = 2, 8, 16, 32

    def norm(x):
        return x / jnp.linalg.norm(x, axis=-1, keepdims=True)

    q = norm(jax.random.normal(k1, (B, Nq, E), dtype=jnp.float32))
    d = norm(jax.random.normal(k2, (B, Nd, E), dtype=jnp.float32))
    tq = norm(jax.random.normal(k3, (B, Nq, E), dtype=jnp.float32))
    td = norm(jax.random.normal(k4, (B, Nd, E), dtype=jnp.float32))

    # 1) Default path: bf16 MXU inputs, auto QB/DB selection.  Compare against
    #    a reference computed from the same bf16-rounded inputs.
    loss_bf16 = jax.block_until_ready(
        colbert_pairwise_distill_kl_loss(q, d, tq, td))
    r = lambda x: x.astype(jnp.bfloat16).astype(jnp.float32)
    ref_bf16 = _reference_loss(r(q), r(d), r(tq), r(td))
    assert jnp.allclose(loss_bf16, ref_bf16, rtol=1e-3, atol=1e-4), (loss_bf16, ref_bf16)

    # 2) Exact-f32 path, forcing the multi-step streaming grid (2 query blocks
    #    x 2 document groups) to exercise slab stores / epilogue offsets.
    loss_f32 = jax.block_until_ready(colbert_pairwise_distill_kl_loss(
        q, d, tq, td, mxu_dtype=jnp.float32,
        query_block_batches=1, doc_block_batches=1))
    ref_f32 = _reference_loss(q, d, tq, td)
    assert jnp.allclose(loss_f32, ref_f32, rtol=1e-3, atol=1e-4), (loss_f32, ref_f32)

    # 3) eval=True: contrastive-only path (no teacher inputs needed).
    loss_eval = jax.block_until_ready(colbert_pairwise_distill_kl_loss(
        q, d, eval=True, mxu_dtype=jnp.float32))
    ref_eval = _reference_loss(q, d, eval=True)
    assert jnp.allclose(loss_eval, ref_eval, rtol=1e-3, atol=1e-4), (loss_eval, ref_eval)

    print("KERNEL_OK")
</pallas_src>

<mosaic_0001>
module attributes {stable_mosaic.version = 11 : i64} {
  func.func @kernel(%arg0: i32, %arg1: i32, %arg2: memref<16x32xbf16, #tpu.memory_space<vmem>>, %arg3: memref<32x32xbf16, #tpu.memory_space<vmem>>, %arg4: memref<16x32xbf16, #tpu.memory_space<vmem>>, %arg5: memref<32x32xbf16, #tpu.memory_space<vmem>>, %arg6: memref<1x1x2xf32, #tpu.memory_space<vmem>>, %arg7: memref<2x2xf32, #tpu.memory_space<vmem>>, %arg8: memref<2x2xf32, #tpu.memory_space<vmem>>) attributes {dimension_semantics = [#tpu.dimension_semantics<parallel>, #tpu.dimension_semantics<arbitrary>], iteration_bounds = array<i64: 1, 1>, scalar_prefetch = 0 : i64, scratch_operands = 2 : i64, tpu.core_type = #tpu.core_type<tc>, window_params = [{transform_indices = @transform_0, window_bounds = array<i64: 16, 32>}, {transform_indices = @transform_1, window_bounds = array<i64: 32, 32>}, {transform_indices = @transform_2, window_bounds = array<i64: 16, 32>}, {transform_indices = @transform_3, window_bounds = array<i64: 32, 32>}, {transform_indices = @transform_4, window_bounds = array<i64: 1, 1, 2>}]} {
    %c2_i32 = arith.constant 2 : i32
    %0 = arith.muli %arg1, %c2_i32 : i32
    %1 = tpu.assume_multiple %0, 2 : i32
    %c0 = arith.constant 0 : index
    %c0_0 = arith.constant 0 : index
    %2 = vector.load %arg2[%c0, %c0_0] : memref<16x32xbf16, #tpu.memory_space<vmem>>, vector<16x32xbf16>
    %c0_1 = arith.constant 0 : index
    %c0_2 = arith.constant 0 : index
    %3 = vector.load %arg3[%c0_1, %c0_2] : memref<32x32xbf16, #tpu.memory_space<vmem>>, vector<32x32xbf16>
    %cst = arith.constant dense<0.000000e+00> : vector<32x16xf32>
    %4 = tpu.matmul %3, %2, %cst {dimension_numbers = #tpu.dot_dimension_numbers<[1], [1], [0], [0], [0, 0, 1, 0], [], []>} : vector<32x32xbf16>, vector<16x32xbf16>, vector<32x16xf32> -> vector<32x16xf32>
    %5 = vector.shape_cast %4 : vector<32x16xf32> to vector<2x16x16xf32>
    %cst_3 = arith.constant dense<0xFF800000> : vector<2x16xf32>
    %6 = vector.multi_reduction <maximumf>, %5, %cst_3 [1] : vector<2x16x16xf32> to vector<2x16xf32>
    %7 = vector.shape_cast %6 : vector<2x16xf32> to vector<2x2x8xf32>
    %cst_4 = arith.constant dense<0.000000e+00> : vector<2x2xf32>
    %8 = vector.multi_reduction <add>, %7, %cst_4 [2] : vector<2x2x8xf32> to vector<2x2xf32>
    %9 = arith.index_cast %1 : i32 to index
    %c0_5 = arith.constant 0 : index
    %10 = vector.load %arg7[%9, %c0_5] : memref<2x2xf32, #tpu.memory_space<vmem>>, vector<2x2xf32>
    tpu.vector_store %arg7[%9, %c0_5], %8 {strides = array<i32>} : memref<2x2xf32, #tpu.memory_space<vmem>>, vector<2x2xf32>,
    %c0_6 = arith.constant 0 : index
    %c0_7 = arith.constant 0 : index
    %11 = vector.load %arg4[%c0_6, %c0_7] : memref<16x32xbf16, #tpu.memory_space<vmem>>, vector<16x32xbf16>
    %c0_8 = arith.constant 0 : index
    %c0_9 = arith.constant 0 : index
    %12 = vector.load %arg5[%c0_8, %c0_9] : memref<32x32xbf16, #tpu.memory_space<vmem>>, vector<32x32xbf16>
    %cst_10 = arith.constant dense<0.000000e+00> : vector<32x16xf32>
    %13 = tpu.matmul %12, %11, %cst_10 {dimension_numbers = #tpu.dot_dimension_numbers<[1], [1], [0], [0], [0, 0, 1, 0], [], []>} : vector<32x32xbf16>, vector<16x32xbf16>, vector<32x16xf32> -> vector<32x16xf32>
    %14 = vector.shape_cast %13 : vector<32x16xf32> to vector<2x16x16xf32>
    %cst_11 = arith.constant dense<0xFF800000> : vector<2x16xf32>
    %15 = vector.multi_reduction <maximumf>, %14, %cst_11 [1] : vector<2x16x16xf32> to vector<2x16xf32>
    %16 = vector.shape_cast %15 : vector<2x16xf32> to vector<2x2x8xf32>
    %cst_12 = arith.constant dense<0.000000e+00> : vector<2x2xf32>
    %17 = vector.multi_reduction <add>, %16, %cst_12 [2] : vector<2x2x8xf32> to vector<2x2xf32>
    %18 = arith.index_cast %1 : i32 to index
    %c0_13 = arith.constant 0 : index
    %19 = vector.load %arg8[%18, %c0_13] : memref<2x2xf32, #tpu.memory_space<vmem>>, vector<2x2xf32>
    tpu.vector_store %arg8[%18, %c0_13], %17 {strides = array<i32>} : memref<2x2xf32, #tpu.memory_space<vmem>>, vector<2x2xf32>,
    %c0_i32 = arith.constant 0 : i32
    %20 = arith.cmpi eq, %arg1, %c0_i32 : i32
    %21 = arith.extui %20 : i1 to i32
    %c0_i32_14 = arith.constant 0 : i32
    %22 = arith.cmpi ne, %21, %c0_i32_14 : i32
    scf.if %22 {
      %c0_15 = arith.constant 0 : index
      %c0_16 = arith.constant 0 : index
      %23 = vector.load %arg7[%c0_15, %c0_16] : memref<2x2xf32, #tpu.memory_space<vmem>>, vector<2x2xf32>
      %c0_17 = arith.constant 0 : index
      %c0_18 = arith.constant 0 : index
      %24 = vector.load %arg8[%c0_17, %c0_18] : memref<2x2xf32, #tpu.memory_space<vmem>>, vector<2x2xf32>
      %25 = tpu.iota {dimensions = array<i32: 0>} : vector<2x2xi32>
      %26 = tpu.iota {dimensions = array<i32: 1>} : vector<2x2xi32>
      %c2_i32_19 = arith.constant 2 : i32
      %27 = arith.muli %arg0, %c2_i32_19 : i32
      %28 = vector.broadcast %27 : i32 to vector<2x2xi32>
      %29 = arith.addi %26, %28 : vector<2x2xi32>
      %30 = arith.cmpi eq, %25, %29 : vector<2x2xi32>
      %cst_20 = arith.constant 0.000000e+00 : f32
      %31 = vector.broadcast %cst_20 : f32 to vector<2x2xf32>
      %32 = arith.select %30, %23, %31 : vector<2x2xi1>, vector<2x2xf32>
      %cst_21 = arith.constant dense<0.000000e+00> : vector<2xf32>
      %33 = vector.multi_reduction <add>, %32, %cst_21 [0] : vector<2x2xf32> to vector<2xf32>
      %34 = vector.shape_cast %33 : vector<2xf32> to vector<1x2xf32>
      %cst_22 = arith.constant 0xFF800000 : f32
      %35 = vector.broadcast %cst_22 : f32 to vector<2x2xf32>
      %36 = arith.select %30, %35, %23 : vector<2x2xi1>, vector<2x2xf32>
      %cst_23 = arith.constant dense<0xFF800000> : vector<2xf32>
      %37 = vector.multi_reduction <maximumf>, %36, %cst_23 [0] : vector<2x2xf32> to vector<2xf32>
      %38 = vector.shape_cast %37 : vector<2xf32> to vector<1x2xf32>
      %39 = arith.subf %38, %34 : vector<1x2xf32>
      %cst_24 = arith.constant 0.000000e+00 : f32
      %40 = vector.broadcast %cst_24 : f32 to vector<1x2xf32>
      %41 = arith.maximumf %39, %40 : vector<1x2xf32>
      %42 = math.absf %39 : vector<1x2xf32>
      %cst_25 = arith.constant 0.000000e+00 : f32
      %43 = vector.broadcast %cst_25 : f32 to vector<1x2xf32>
      %44 = arith.subf %43, %42 : vector<1x2xf32>
      %45 = math.exp %44 : vector<1x2xf32>
      %cst_26 = arith.constant 1.000000e+00 : f32
      %46 = vector.broadcast %cst_26 : f32 to vector<1x2xf32>
      %47 = arith.addf %46, %45 : vector<1x2xf32>
      %48 = math.log %47 : vector<1x2xf32>
      %49 = arith.addf %41, %48 : vector<1x2xf32>
      %cst_27 = arith.constant 1.000000e+00 : f32
      %50 = vector.broadcast %cst_27 : f32 to vector<2x2xf32>
      %51 = arith.mulf %23, %50 : vector<2x2xf32>
      %cst_28 = arith.constant dense<0xFF800000> : vector<2xf32>
      %52 = vector.multi_reduction <maximumf>, %51, %cst_28 [0] : vector<2x2xf32> to vector<2xf32>
      %53 = vector.shape_cast %52 : vector<2xf32> to vector<1x2xf32>
      %54 = vector.broadcast %53 : vector<1x2xf32> to vector<2x2xf32>
      %55 = arith.subf %51, %54 : vector<2x2xf32>
      %56 = math.exp %55 : vector<2x2xf32>
      %cst_29 = arith.constant dense<0.000000e+00> : vector<2xf32>
      %57 = vector.multi_reduction <add>, %56, %cst_29 [0] : vector<2x2xf32> to vector<2xf32>
      %58 = vector.shape_cast %57 : vector<2xf32> to vector<1x2xf32>
      %59 = math.log %58 : vector<1x2xf32>
      %60 = vector.broadcast %59 : vector<1x2xf32> to vector<2x2xf32>
      %61 = arith.subf %55, %60 : vector<2x2xf32>
      %cst_30 = arith.constant 1.000000e+00 : f32
      %62 = vector.broadcast %cst_30 : f32 to vector<2x2xf32>
      %63 = arith.mulf %24, %62 : vector<2x2xf32>
      %cst_31 = arith.constant dense<0xFF800000> : vector<2xf32>
      %64 = vector.multi_reduction <maximumf>, %63, %cst_31 [0] : vector<2x2xf32> to vector<2xf32>
      %65 = vector.shape_cast %64 : vector<2xf32> to vector<1x2xf32>
      %66 = vector.broadcast %65 : vector<1x2xf32> to vector<2x2xf32>
      %67 = arith.subf %63, %66 : vector<2x2xf32>
      %68 = math.exp %67 : vector<2x2xf32>
      %cst_32 = arith.constant dense<0.000000e+00> : vector<2xf32>
      %69 = vector.multi_reduction <add>, %68, %cst_32 [0] : vector<2x2xf32> to vector<2xf32>
      %70 = vector.shape_cast %69 : vector<2xf32> to vector<1x2xf32>
      %71 = math.log %70 : vector<1x2xf32>
      %72 = vector.broadcast %71 : vector<1x2xf32> to vector<2x2xf32>
      %73 = arith.subf %67, %72 : vector<2x2xf32>
      %74 = math.exp %73 : vector<2x2xf32>
      %cst_33 = arith.constant 0.000000e+00 : f32
      %75 = vector.broadcast %cst_33 : f32 to vector<2x2xf32>
      %76 = arith.cmpf ogt, %74, %75 : vector<2x2xf32>
      %77 = arith.subf %73, %61 : vector<2x2xf32>
      %78 = arith.mulf %74, %77 : vector<2x2xf32>
      %cst_34 = arith.constant 0.000000e+00 : f32
      %79 = vector.broadcast %cst_34 : f32 to vector<2x2xf32>
      %80 = arith.select %76, %78, %79 : vector<2x2xi1>, vector<2x2xf32>
      %cst_35 = arith.constant dense<0.000000e+00> : vector<2xf32>
      %81 = vector.multi_reduction <add>, %80, %cst_35 [0] : vector<2x2xf32> to vector<2xf32>
      %82 = vector.shape_cast %81 : vector<2xf32> to vector<1x2xf32>
      %cst_36 = arith.constant 5.000000e-01 : f32
      %83 = vector.broadcast %cst_36 : f32 to vector<1x2xf32>
      %84 = arith.mulf %83, %82 : vector<1x2xf32>
      %85 = arith.addf %49, %84 : vector<1x2xf32>
      %86 = vector.shape_cast %85 : vector<1x2xf32> to vector<1x1x2xf32>
      %c0_37 = arith.constant 0 : index
      %c0_38 = arith.constant 0 : index
      %c0_39 = arith.constant 0 : index
      %87 = vector.load %arg6[%c0_37, %c0_38, %c0_39] : memref<1x1x2xf32, #tpu.memory_space<vmem>>, vector<1x1x2xf32>
      tpu.vector_store %arg6[%c0_37, %c0_38, %c0_39], %86 {strides = array<i32>} : memref<1x1x2xf32, #tpu.memory_space<vmem>>, vector<1x1x2xf32>,
    } else {
    }
    return
  }
  func.func @transform_0(%arg0: i32, %arg1: i32) -> (i32, i32) {
    %c0_i32 = arith.constant 0 : i32
    %c0_i32_0 = arith.constant 0 : i32
    return %arg0, %c0_i32 : i32, i32
  }
  func.func @transform_1(%arg0: i32, %arg1: i32) -> (i32, i32) {
    %c0_i32 = arith.constant 0 : i32
    %c0_i32_0 = arith.constant 0 : i32
    return %arg1, %c0_i32 : i32, i32
  }
  func.func @transform_2(%arg0: i32, %arg1: i32) -> (i32, i32) {
    %c0_i32 = arith.constant 0 : i32
    %c0_i32_0 = arith.constant 0 : i32
    return %arg0, %c0_i32 : i32, i32
  }
  func.func @transform_3(%arg0: i32, %arg1: i32) -> (i32, i32) {
    %c0_i32 = arith.constant 0 : i32
    %c0_i32_0 = arith.constant 0 : i32
    return %arg1, %c0_i32 : i32, i32
  }
  func.func @transform_4(%arg0: i32, %arg1: i32) -> (i32, i32, i32) {
    %c0_i32 = arith.constant 0 : i32
    %c0_i32_0 = arith.constant 0 : i32
    %c0_i32_1 = arith.constant 0 : i32
    return %arg0, %c0_i32, %c0_i32_0 : i32, i32, i32
  }
}

</mosaic_0001>

<bundles_post_ra>
// kernel: tpu_custom_call.1
= control target key start
LH: loop header
LB: loop body
LE: loop exit
PB: predicated region body
PF: predicated region fallthrough
CT: control target
= control target key end

     0   :  { %9 = vsyncpa [#allocation5], 0  ;;  %s802_s0 = inlined_call_operand.hbm [shape: bf16[16,32], index: 0, kind: input, shape index: {}]   ;;  %s803_s1 = inlined_call_operand.hbm [shape: bf16[32,32], index: 1, kind: input, shape index: {}]   ;;  %s804_s2 = inlined_call_operand.hbm [shape: bf16[16,32], index: 2, kind: input, shape index: {}]   ;;  %s805_s3 = inlined_call_operand.hbm [shape: bf16[32,32], index: 3, kind: input, shape index: {}]   ;;  %s806_s4 = inlined_call_operand.hbm [shape: f32[1,1,2], index: 4, kind: output, shape index: {}]  }
   0x1   :  { %10 = vsyncpa [#allocation8], 0 }
   0x2   :  { %11 = vsyncpa [#allocation11], 0 }
   0x3   :  { %12 = vsyncpa [#allocation6], 0  ;;  %s648_s15 = smov [#allocation7]   ;;  %s649_s17 = smov [#allocation4]  }
   0x4   :  { %s30_s16 = sshll.u32 %s648_s15, 4  ;;  %s18_s18 = sshll.u32 %s649_s17, 4  ;;  %s31_s16 = int_to_ptr.vmem [resolvable:$true] %s30_s16  ;;  %s683_s18 = int_to_ptr.vmem [resolvable:$true] %s18_s18 }
   0x5   :  { %s530_s21 = scalar_lea.hbm %s803_s1, 256 }
   0x6   :  { %p531_p0 = scmp.ne.s32.totalorder %s803_s1, %s530_s21  ;;  %p534_p1 = scmp.lt.u32.totalorder %s530_s21, %s803_s1 }
   0x8   :  { %p536_p2 = pnand %p534_p1, %p531_p0 }
   0xa   :  { %539 = shalt.err (!%p536_p2)
}
   0xb   :  { %s540_s26 = scalar_lea.vmem %s31_s16, 256  ;;  %p545_p4 = scmp.lt.s32.totalorder %s31_s16, %s31_s16 }
   0xc   :  { %p541_p3 = scmp.ne.s32.totalorder %s31_s16, %s540_s26  ;;  %p546_p5 = scmp.lt.s32.totalorder %s540_s26, %s540_s26 }
   0xe   :  { %p547_p6 = por %p546_p5, %p545_p4 }
  0x10   :  { %p548_p7 = pnand %p547_p6, %p541_p3 }
  0x12   :  { %551 = shalt.err (!%p548_p7)
}
  0x13   :  { %s650_s27 = smov 64   ;;  %s651_s28 = smov 4  }
  0x14   :  { %36 = dma.hbm_to_vmem [thread:$0]  %s803_s1, 256, %s31_s16, [#allocation8], %s650_s27, %s650_s27, %s651_s28  }
  0x15   :  { %s552_s7 = scalar_lea.hbm %s802_s0, 128 }
  0x16   :  { %p553_p8 = scmp.ne.s32.totalorder %s802_s0, %s552_s7  ;;  %p556_p9 = scmp.lt.u32.totalorder %s552_s7, %s802_s0 }
  0x18   :  { %p558_p10 = pnand %p556_p9, %p553_p8 }
  0x1a   :  { %561 = shalt.err (!%p558_p10)
}
  0x1b   :  { %s562_s12 = scalar_lea.vmem %s683_s18, 128  ;;  %p567_p12 = scmp.lt.s32.totalorder %s683_s18, %s683_s18 }
  0x1c   :  { %p563_p11 = scmp.ne.s32.totalorder %s683_s18, %s562_s12  ;;  %p568_p13 = scmp.lt.s32.totalorder %s562_s12, %s562_s12 }
  0x1e   :  { %p569_p0 = por %p568_p13, %p567_p12 }
  0x20   :  { %p570_p1 = pnand %p569_p0, %p563_p11 }
  0x22   :  { %573 = shalt.err (!%p570_p1)
}
  0x23   :  { %24 = dma.hbm_to_vmem [thread:$0]  %s802_s0, 128, %s683_s18, [#allocation5], %s650_s27, %s650_s27, %s651_s28  }
  0x24   :  { %s652_s14 = smov [#allocation9]   ;;  %s653_s16 = smov [#allocation10]  }
  0x25   :  { %s42_s15 = sshll.u32 %s652_s14, 4  ;;  %s54_s17 = sshll.u32 %s653_s16, 4  ;;  %s43_s15 = int_to_ptr.vmem [resolvable:$true] %s42_s15  ;;  %s720_s17 = int_to_ptr.vmem [resolvable:$true] %s54_s17 }
  0x26   :  { %s574_s21 = scalar_lea.hbm %s804_s2, 128 }
  0x27   :  { %p575_p2 = scmp.ne.s32.totalorder %s804_s2, %s574_s21  ;;  %p578_p3 = scmp.lt.u32.totalorder %s574_s21, %s804_s2 }
  0x29   :  { %p580_p4 = pnand %p578_p3, %p575_p2 }
  0x2b   :  { %583 = shalt.err (!%p580_p4)
}
  0x2c   :  { %s584_s0 = scalar_lea.vmem %s43_s15, 128  ;;  %p589_p6 = scmp.lt.s32.totalorder %s43_s15, %s43_s15 }
  0x2d   :  { %p585_p5 = scmp.ne.s32.totalorder %s43_s15, %s584_s0  ;;  %p590_p7 = scmp.lt.s32.totalorder %s584_s0, %s584_s0 }
  0x2f   :  { %p591_p8 = por %p590_p7, %p589_p6 }
  0x31   :  { %p592_p9 = pnand %p591_p8, %p585_p5 }
  0x33   :  { %595 = shalt.err (!%p592_p9)
}
  0x34   :  { %48 = dma.hbm_to_vmem [thread:$0]  %s804_s2, 128, %s43_s15, [#allocation8], %s650_s27, %s650_s27, %s651_s28  }
  0x35   :  { %s596_s5 = scalar_lea.hbm %s805_s3, 256 }
  0x36   :  { %p597_p10 = scmp.ne.s32.totalorder %s805_s3, %s596_s5  ;;  %p600_p11 = scmp.lt.u32.totalorder %s596_s5, %s805_s3 }
  0x38   :  { %p602_p12 = pnand %p600_p11, %p597_p10 }
  0x3a   :  { %605 = shalt.err (!%p602_p12)
}
  0x3b   :  { %s606_s10 = scalar_lea.vmem %s720_s17, 256  ;;  %p611_p0 = scmp.lt.s32.totalorder %s720_s17, %s720_s17 }
  0x3c   :  { %p607_p13 = scmp.ne.s32.totalorder %s720_s17, %s606_s10  ;;  %p612_p1 = scmp.lt.s32.totalorder %s606_s10, %s606_s10 }
  0x3e   :  { %p613_p2 = por %p612_p1, %p611_p0 }
  0x40   :  { %p614_p3 = pnand %p613_p2, %p607_p13 }
  0x42   :  { %617 = shalt.err (!%p614_p3)
}
  0x43   :  { %60 = dma.hbm_to_vmem [thread:$0]  %s805_s3, 256, %s720_s17, [#allocation11], %s650_s27, %s650_s27, %s651_s28  }
  0x44   :  { %640 = dma.done.wait [#allocation5], 128  }
  0x45   :  { %641 = vsyncadd [#allocation5], 4294967168 }
  0x46   :  { %642 = dma.done.wait [#allocation8], 384  }
  0x47   :  { %643 = vsyncadd [#allocation8], 4294966912 }
  0x48   :  { %644 = dma.done.wait [#allocation11], 256  }
  0x49   :  { %645 = vsyncadd [#allocation11], 4294967040  ;;  %vm96_vm0 = vcmask 261120   ;;  %v510_v0 = vld [vmem:[#allocation4] sm:$0xff]   ;;  %v511_v1 = vld [vmem:[#allocation9] sm:$0xff]   ;;  %vm155_vm1 = vcmask 130048   ;;  %v191_v55 = vlaneseq }
  0x4a   :  { %498 = vmatprep.subr.msk.bf16.mxu0 %vm96_vm0, %v510_v0  ;;  %v104_v2 = vsel %vm96_vm0, %v510_v0, 0  ;;  %v512_v3 = vld [vmem:[#allocation7] sm:$0xff]   ;;  %499 = vmatprep.subr.msk.bf16.mxu1 %vm96_vm0, %v511_v1  ;;  %v248_v4 = vsel %vm96_vm0, %v511_v1, 0  ;;  %v513_v5 = vld [vmem:[#allocation10] sm:$0xff]   ;;  %v514_v6 = vld [vmem:[#allocation7 + $0x8] sm:$0xff]   ;;  %vm181_vm2 = vcmask 1041409  }
  0x4b   :  { %487 = vmatpush3.bf16.xpose.msra.mxu0 %v104_v2  ;;  %493 = vmatpush3.bf16.xpose.msra.mxu1 %v248_v4  ;;  %v515_v7 = vld [vmem:[#allocation10 + $0x8] sm:$0xff]   ;;  %s654_s3 = smov 120   ;;  %v192_v57 = vshrl.u32 %v191_v55, 7  ;;  %v206_v58 = vand.u32 127, %v191_v55  ;;  %v655_v60 = vmov 1934713408  }
  0x4c   :  { %488 = vmatprep.mubr.msk.bf16.mxu0 %vm96_vm0, %v512_v3  ;;  %494 = vmatprep.mubr.msk.bf16.mxu1 %vm96_vm0, %v513_v5  ;;  %v189_v61 = vunpack.c.l.s4 %v655_v60  ;;  %vm196_vm4 = vcmask 58368   ;;  %vm218_vm5 = vcmask 9216   ;;  %s657_s27 = smov [#allocation12]   ;;  %vm451_vm7 = vcmask 8192  }
  0x4d   :  { %v209_v59 = vsub.s32 %v206_v58, %v192_v57  ;;  %vm369_vm3 = vcmp.eq.s32.totalorder %v192_v57, %v206_v58  ;;  %s459_s28 = sshll.u32 %s657_s27, 4  ;;  %s460_s28 = int_to_ptr.vmem [resolvable:$true] %s459_s28 }
  0x4e   :  { %v190_v1 = vunpack.c.0.s8 %v189_v61  ;;  %s618_s12 = scalar_lea.vmem %s460_s28, 16  ;;  %s622_s1 = scalar_lea.vmem %s460_s28, 32 }
  0x4f   :  { %p619_p4 = scmp.ne.s32.totalorder %s460_s28, %s618_s12  ;;  %p623_p5 = scmp.lt.s32.totalorder %s460_s28, %s460_s28 }
  0x50   :  { %p624_p6 = scmp.lt.s32.totalorder %s622_s1, %s618_s12 }
  0x52   :  { %489 = vmatmul.mubr.msk.bf16.vlgmr.msra.gmra.mrb[0].mxu0 %vm96_vm0, %v514_v6  ;;  %495 = vmatmul.mubr.msk.bf16.vlgmr.msra.gmra.mrb[0].mxu1 %vm96_vm0, %v515_v7  ;;  %v193_v6 = vsub.s32 %v190_v1, %v192_v57  ;;  %p625_p7 = por %p624_p6, %p623_p5 }
  0x54   :  { %p626_p8 = pnand %p625_p7, %p619_p4 }
 0x125   :  { %v490_v8 = vpop.f32.mrb[0].mxu0  ;;  %v496_v10 = vpop.f32.mrb[0].mxu1 }
 0x126   :  { %v165_v9 = vsel %vm155_vm1, %v490_v8, -inf  ;;  %v140_v11 = vpop.f32.mrb[1].mxu0  ;;  %v284_v13 = vpop.f32.mrb[1].mxu1  ;;  %v308_v18 = vsel %vm155_vm1, %v496_v10, -inf }
 0x127   :  { %v156_v12 = vsel %vm155_vm1, %v140_v11, -inf  ;;  %v491_v14 = vpop.f32.mrb[2].mxu0  ;;  %v497_v16 = vpop.f32.mrb[2].mxu1  ;;  %v299_v23 = vsel %vm155_vm1, %v284_v13, -inf }
 0x128   :  { %v166_v15 = vsel %vm155_vm1, %v491_v14, -inf  ;;  %v143_v17 = vpop.f32.mrb[3].mxu0  ;;  %v309_v20 = vsel %vm155_vm1, %v497_v16, -inf  ;;  %v287_v22 = vpop.f32.mrb[3].mxu1 }
 0x129   :  { %v167_v19 = vmax.f32 %v165_v9, %v166_v15  ;;  %v157_v21 = vsel %vm155_vm1, %v143_v17, -inf  ;;  %v310_v24 = vmax.f32 %v308_v18, %v309_v20  ;;  %v300_v26 = vsel %vm155_vm1, %v287_v22, -inf }
 0x12a   :  { %v158_v25 = vmax.f32 %v156_v12, %v157_v21  ;;  %v301_v28 = vmax.f32 %v299_v23, %v300_v26  ;;  %v656_v12 = vmov 0.0  }
 0x12b   :  { %v168_v27 = vrot.slane %v167_v19, 4  ;;  %v311_v29 = vrot.slane %v310_v24, 4 }
 0x12c   :  { %v159_v30 = vrot.slane %v158_v25, 4  ;;  %v302_v32 = vrot.slane %v301_v28, 4 }
 0x12d   :  { %v169_v31 = vmax.f32 %v167_v19, %v168_v27  ;;  %v312_v33 = vmax.f32 %v310_v24, %v311_v29 }
 0x12e   :  { %v160_v34 = vmax.f32 %v158_v25, %v159_v30  ;;  %v303_v35 = vmax.f32 %v301_v28, %v302_v32 }
 0x12f   :  { %v170_v36 = vrot.slane %v169_v31, 2  ;;  %v313_v38 = vrot.slane %v312_v33, 2 }
 0x130   :  { %v161_v37 = vrot.slane %v160_v34, 2  ;;  %v304_v39 = vrot.slane %v303_v35, 2 }
 0x131   :  { %v171_v40 = vmax.f32 %v169_v31, %v170_v36  ;;  %v314_v42 = vmax.f32 %v312_v33, %v313_v38 }
 0x132   :  { %v162_v41 = vmax.f32 %v160_v34, %v161_v37  ;;  %v305_v43 = vmax.f32 %v303_v35, %v304_v39 }
 0x133   :  { %v172_v44 = vrot.slane %v171_v40, 1  ;;  %v315_v45 = vrot.slane %v314_v42, 1 }
 0x134   :  { %v163_v46 = vrot.slane %v162_v41, 1  ;;  %v306_v48 = vrot.slane %v305_v43, 1 }
 0x135   :  { %v173_v47 = vmax.f32 %v171_v40, %v172_v44  ;;  %v316_v49 = vmax.f32 %v314_v42, %v315_v45 }
 0x136   :  { %v164_v50 = vmax.f32 %v162_v41, %v163_v46  ;;  %v307_v52 = vmax.f32 %v305_v43, %v306_v48 }
 0x137   :  { %178 = vrot.lane.b32.xlu1 %v173_v47, %s654_s3  ;;  %v180_v51 = vrot.slane %v173_v47, 7  ;;  %321 = vrot.lane.b32.xlu0 %v316_v49, %s654_s3  ;;  %v323_v53 = vrot.slane %v316_v49, 7 }
 0x139   :  { %v182_v54 = vsel %vm181_vm2, %v180_v51, %v164_v50  ;;  %v324_v56 = vsel %vm181_vm2, %v323_v53, %v307_v52 }
 0x13b   :  { %176 = vrot.lane.b32.xlu1 %v164_v50, %s654_s3  ;;  %319 = vrot.lane.b32.xlu0 %v307_v52, %s654_s3 }
 0x1a9   :  { %v179_v62 = vpop.permute.xlu1 %178  ;;  %v322_v63 = vpop.permute.xlu0 %321 }
 0x1aa   :  { %v183_v0 = vrot.slane %v179_v62, 7  ;;  %v325_v2 = vrot.slane %v322_v63, 7 }
 0x1ad   :  { %v177_v3 = vpop.permute.xlu1 %176  ;;  %v320_v4 = vpop.permute.xlu0 %319 }
 0x1ae   :  { %v184_v5 = vsel %vm181_vm2, %v183_v0, %v177_v3  ;;  %v326_v7 = vsel %vm181_vm2, %v325_v2, %v320_v4 }
 0x1af   :  { %v329_v8 = vcombine.low %v324_v56, %v326_v7  ;;  %v187_v9 = vcombine.low %v182_v54, %v184_v5 }
 0x1b1   :  { %v336_v10 = vrot.slane %v329_v8, %v193_v6  ;;  %v194_v14 = vrot.slane %v187_v9, %v193_v6 }
 0x1b3   :  { %v338_v11 = vsel %vm196_vm4, %v336_v10, 0.0  ;;  %v337_v13 = vcombine.high %v336_v10, %v656_v12  ;;  %v197_v16 = vsel %vm196_vm4, %v194_v14, 0.0  ;;  %v195_v17 = vcombine.high %v194_v14, %v656_v12 }
 0x1b4   :  { %339 = vadd.xlane.f32.xlu0 %v338_v11 }
 0x1b5   :  { %v341_v15 = vsel %vm196_vm4, %v337_v13, 0.0  ;;  %v200_v18 = vsel %vm196_vm4, %v195_v17, 0.0 }
 0x1b6   :  { %342 = vadd.xlane.f32.xlu1 %v341_v15 }
 0x1b8   :  { %198 = vadd.xlane.f32.xlu0 %v197_v16 }
 0x1bc   :  { %201 = vadd.xlane.f32.xlu0 %v200_v18 }
 0x241   :  { %v340_v19 = vpop.xlane.xlu0 %339 }
 0x242   :  { %v349_v21 = vrot.slane %v340_v19, %v209_v59 }
 0x243   :  { %v343_v20 = vpop.xlane.xlu1 %342 }
 0x244   :  { %v353_v22 = vrot.slane %v343_v20, %v209_v59 }
 0x245   :  { %v199_v23 = vpop.xlane.xlu0 %198 }
 0x246   :  { %v354_v24 = vsel %vm181_vm2, %v353_v22, %v349_v21  ;;  %v210_v26 = vrot.slane %v199_v23, %v209_v59 }
 0x247   :  { %357 = vst.msk [vmem:[#allocation3] sm:$0x3] %vm218_vm5, %v354_v24 }
 0x249   :  { %v202_v25 = vpop.xlane.xlu0 %201 }
 0x24a   :  { %v214_v27 = vrot.slane %v202_v25, %v209_v59 }
 0x24c   :  { %v215_v28 = vsel %vm181_vm2, %v214_v27, %v210_v26 }
 0x24d   :  { %219 = vst.msk [vmem:[#allocation2] sm:$0x3] %vm218_vm5, %v215_v28 }
 0x24e   :  { %v363_v29 = vld [vmem:[#allocation3] sm:$0x3] }
 0x24f   :  { %v416_v30 = vsel %vm218_vm5, %v363_v29, -inf }
 0x250   :  { %v417_v31 = vrot.slane %v416_v30, 4 }
 0x252   :  { %v418_v32 = vmax.f32 %v416_v30, %v417_v31 }
 0x254   :  { %v362_v33 = vld [vmem:[#allocation2] sm:$0x3]  ;;  %v419_v34 = vrot.slane %v418_v32, 2 }
 0x255   :  { %v370_v35 = vsel %vm369_vm3, %v362_v33, 0.0  ;;  %v378_v36 = vsel %vm369_vm3, -inf, %v362_v33  ;;  %v396_v37 = vsel %vm218_vm5, %v362_v33, -inf }
 0x256   :  { %v397_v38 = vrot.slane %v396_v37, 4  ;;  %v420_v39 = vmax.f32 %v418_v32, %v419_v34  ;;  %v371_v40 = vsel %vm218_vm5, %v370_v35, 0.0  ;;  %v379_v41 = vsel %vm218_vm5, %v378_v36, -inf }
 0x257   :  { %v372_v46 = vrot.slane %v371_v40, 4  ;;  %v380_v47 = vrot.slane %v379_v41, 4 }
 0x258   :  { %v398_v42 = vmax.f32 %v396_v37, %v397_v38  ;;  %v421_v43 = vrot.slane %v420_v39, 1 }
 0x259   :  { %v373_v52 = vadd.f32 %v372_v46, %v371_v40  ;;  %v381_v53 = vmax.f32 %v379_v41, %v380_v47 }
 0x25a   :  { %v399_v44 = vrot.slane %v398_v42, 2  ;;  %v422_v45 = vmax.f32 %v420_v39, %v421_v43 }
 0x25b   :  { %v374_v56 = vrot.slane %v373_v52, 2  ;;  %v382_v57 = vrot.slane %v381_v53, 2 }
 0x25c   :  { %v400_v48 = vmax.f32 %v398_v42, %v399_v44  ;;  %v423_v49 = vsub.f32 %v363_v29, %v422_v45 }
 0x25d   :  { %v375_v59 = vadd.f32 %v374_v56, %v373_v52  ;;  %v383_v60 = vmax.f32 %v381_v53, %v382_v57 }
 0x25e   :  { %v401_v50 = vrot.slane %v400_v48, 1  ;;  %v424_v51 = vmul.f32 1.442695, %v423_v49 }
 0x25f   :  { %v376_v62 = vrot.slane %v375_v59, 1  ;;  %v384_v63 = vrot.slane %v383_v60, 1 }
 0x260   :  { %v402_v54 = vmax.f32 %v400_v48, %v401_v50  ;;  %516 = vpow2.f32 %v424_v51 }
 0x261   :  { %v377_v3 = vadd.f32 %v376_v62, %v375_v59  ;;  %v385_v4 = vmax.f32 %v383_v60, %v384_v63 }
 0x262   :  { %v403_v55 = vsub.f32 %v362_v33, %v402_v54 }
 0x263   :  { %v386_v10 = vsub.f32 %v385_v4, %v377_v3 }
 0x264   :  { %v404_v58 = vmul.f32 1.442695, %v403_v55 }
 0x265   :  { %v388_v15 = vand.u32 2147483647, %v386_v10  ;;  %v387_v42 = vmax.f32 %v386_v10, 0.0 }
 0x266   :  { %518 = vpow2.f32 %v404_v58 }
 0x267   :  { %v389_v18 = vsub.f32 0.0, %v388_v15 }
 0x269   :  { %v390_v20 = vmul.f32 1.442695, %v389_v18 }
 0x26a   :  { %v517_v61 = vpop.eup %516 }
 0x26b   :  { %v426_v0 = vsel %vm218_vm5, %v517_v61, 0.0 }
 0x26c   :  { %v427_v1 = vrot.slane %v426_v0, 4 }
 0x26e   :  { %v428_v2 = vadd.f32 %v427_v1, %v426_v0 }
 0x270   :  { %v519_v5 = vpop.eup %518  ;;  %v429_v6 = vrot.slane %v428_v2, 2 }
 0x271   :  { %v406_v7 = vsel %vm218_vm5, %v519_v5, 0.0 }
 0x272   :  { %v407_v8 = vrot.slane %v406_v7, 4  ;;  %v430_v9 = vadd.f32 %v429_v6, %v428_v2 }
 0x274   :  { %v408_v11 = vadd.f32 %v407_v8, %v406_v7  ;;  %v431_v12 = vrot.slane %v430_v9, 1 }
 0x276   :  { %v409_v13 = vrot.slane %v408_v11, 2  ;;  %v432_v14 = vadd.f32 %v431_v12, %v430_v9 }
 0x278   :  { %v410_v16 = vadd.f32 %v409_v13, %v408_v11  ;;  %520 = vlog2.f32 %v432_v14 }
 0x27a   :  { %v411_v17 = vrot.slane %v410_v16, 1 }
 0x27c   :  { %v412_v19 = vadd.f32 %v411_v17, %v410_v16 }
 0x27e   :  { %522 = vlog2.f32 %v412_v19 }
 0x27f   :  { %524 = vpow2.f32 %v390_v20 }
 0x282   :  { %v521_v21 = vpop.eup %520 }
 0x283   :  { %v434_v22 = vmul.f32 0.6931472, %v521_v21 }
 0x285   :  { %v435_v23 = vsub.f32 %v423_v49, %v434_v22 }
 0x287   :  { %v436_v25 = vmul.f32 1.442695, %v435_v23 }
 0x288   :  { %v523_v24 = vpop.eup %522 }
 0x289   :  { %526 = vpow2.f32 %v436_v25  ;;  %v414_v26 = vmul.f32 0.6931472, %v523_v24  ;;  %v525_v27 = vpop.eup %524 }
 0x28a   :  { %v392_v29 = vadd.f32 1.0, %v525_v27 }
 0x28b   :  { %v415_v28 = vsub.f32 %v403_v55, %v414_v26 }
 0x28c   :  { %528 = vlog2.f32 %v392_v29 }
 0x28d   :  { %v439_v30 = vsub.f32 %v435_v23, %v415_v28 }
 0x293   :  { %v527_v31 = vpop.eup %526 }
 0x294   :  { %vm438_vm6 = vcmp.gt.f32.partialorder %v527_v31, 0.0  ;;  %v440_v32 = vmul.f32 %v527_v31, %v439_v30 }
 0x296   :  { %v441_v33 = vsel %vm438_vm6, %v440_v32, 0.0  ;;  %v529_v38 = vpop.eup %528 }
 0x297   :  { %v442_v34 = vsel %vm218_vm5, %v441_v33, 0.0  ;;  %v394_v40 = vmul.f32 0.6931472, %v529_v38 }
 0x298   :  { %v443_v35 = vrot.slane %v442_v34, 4 }
 0x299   :  { %v395_v44 = vadd.f32 %v394_v40, %v387_v42 }
 0x29a   :  { %v444_v36 = vadd.f32 %v443_v35, %v442_v34 }
 0x29c   :  { %v445_v37 = vrot.slane %v444_v36, 2 }
 0x29e   :  { %v446_v39 = vadd.f32 %v445_v37, %v444_v36 }
 0x2a0   :  { %v447_v41 = vrot.slane %v446_v39, 1 }
 0x2a2   :  { %v448_v43 = vadd.f32 %v447_v41, %v446_v39 }
 0x2a4   :  { %v449_v45 = vmul.f32 0.5, %v448_v43 }
 0x2a6   :  { %v450_v46 = vadd.f32 %v449_v45, %v395_v44 }
 0x2a8   :  { %452 = vst.msk [vmem:[#allocation12] sm:$0x1] %vm451_vm7, %v450_v46 }
 0x2a9   :  { %629 = shalt.err (!%p626_p8)
}
 0x2aa   :  { %s630_s15 = scalar_lea.hbm %s806_s4, 16 }
 0x2ab   :  { %p631_p9 = scmp.ne.s32.totalorder %s806_s4, %s630_s15  ;;  %p634_p10 = scmp.lt.u32.totalorder %s630_s15, %s806_s4 }
 0x2ad   :  { %p636_p11 = pnand %p634_p10, %p631_p9 }
 0x2af   :  { %639 = shalt.err (!%p636_p11)
}
 0x2b0   :  { %462 = dma.vmem_to_hbm [thread:$0]  %s460_s28, 16, %s806_s4, [#allocation6]  }
 0x2b1   :  { %646 = dma.done.wait [#allocation6], 16  }
 0x2b2   :  { %647 = vsyncadd [#allocation6], 4294967280 }
 0x2b3   :  { %466 = vsyncpa [#allocation5], 1 }
 0x2b4   :  { %467 = vsyncpa [#allocation8], 1 }
 0x2b5   :  { %468 = vsyncpa [#allocation11], 1 }
 0x2b6   :  { %469 = vsyncpa [#allocation6], 1 }

</bundles_post_ra>
